<compile_context>
chip_gen: v6e
topology: v6e:2x2x1
jax: 0.10.0
libtpu: 0.0.40
codegen_flags: <defaults>
</compile_context>

<pallas_src>
import functools

import jax
import jax.numpy as jnp
from jax.experimental import pallas as pl
from jax.experimental.pallas import tpu as pltpu


def _round_up(v, m):
    return ((v + m - 1) // m) * m


def _vmem_capacity_cap():
    """~85% of physical VMEM; conservative 64 MiB (v7x/TC) fallback."""
    try:
        cap = int(pltpu.get_tpu_info().vmem_capacity_bytes)
    except Exception:
        cap = 64 << 20
    return max(int(cap * 0.85), 32 << 20)


def _mlp_kernel(*refs, num_layers, use_scratch):
    # refs = (x_ref, w0, b0, ..., w_{L-1}, b_{L-1}, o_ref[, act_scratch])
    x_ref = refs[0]
    o_ref = refs[1 + 2 * num_layers]
    act_ref = refs[2 + 2 * num_layers] if use_scratch else None

    h = x_ref[...].astype(jnp.float32)               # [TM, K0p]
    for i in range(num_layers):
        w_ref = refs[1 + 2 * i]                       # [Kip, Nip] (bf16)
        b_ref = refs[2 + 2 * i]                       # [1,   Nip] (f32)
        # bf16 MXU operands, f32 accumulation.
        y = jnp.dot(h.astype(jnp.bfloat16), w_ref[...],
                    preferred_element_type=jnp.float32)
        y = y + b_ref[...].astype(jnp.float32)        # bias add in f32
        if i < num_layers - 1:
            y = jnp.maximum(y, 0.0)                   # ReLU in f32
            if use_scratch:
                n_p = w_ref.shape[1]
                act_ref[:, :n_p] = y                  # stage through VMEM
                h = act_ref[:, :n_p]
            else:
                h = y
        else:
            o_ref[...] = y.astype(o_ref.dtype)


def prepare_mlp_params(params, weight_dtype=jnp.bfloat16, feature_align=128):
    """Pad feature dims (lane-dense) and cast weights to bf16.  Call ONCE.

    feature_align=256 can improve MXU fill on v6e/v7x when dims pad to odd
    multiples of 128; 128 is native on v5e.  Zero padding is numerically exact:
    padded bias is 0, ReLU(0)=0 and the padded K-rows of the next weight are 0.
    Returns (padded_params, output_dim).
    """
    in_dim_p = _round_up(params[0][0].shape[0], feature_align)
    padded = []
    for (w, b) in params:
        k, n = w.shape
        n_p = _round_up(n, feature_align)
        w_pad = (jnp.zeros((in_dim_p, n_p), weight_dtype)
                 .at[:k, :n].set(w.astype(weight_dtype)))
        b_pad = (jnp.zeros((1, n_p), jnp.float32)
                 .at[0, :n].set(b.astype(jnp.float32)))
        padded.append((w_pad, b_pad))
        in_dim_p = n_p
    return padded, params[-1][0].shape[1]


def mlp_forward(padded_params, x, *, output_dim, tile_m=512):
    """Fused MLP on pre-padded params.  x: [..., input_dim] -> [..., output_dim]."""
    num_layers = len(padded_params)
    lead_shape = x.shape[:-1]
    xm = x.reshape(-1, x.shape[-1])                   # [M, K]
    M, K = xm.shape
    Kp = padded_params[0][0].shape[0]
    Np = padded_params[-1][0].shape[1]
    assert Kp >= K and Kp % 128 == 0

    # --- M tiling: guarantee >=2 grid steps when possible (v7x megacore) ---
    if M <= 2 * tile_m:
        TM = max(8, _round_up(-(-M // 2), 8))
    else:
        TM = _round_up(tile_m, 8)
    Mp = _round_up(M, TM)
    grid_m = Mp // TM

    # --- pad x only when needed (skip the HBM copy if already aligned) ---
    if K == Kp and M == Mp:
        x_pad = xm
    else:
        x_pad = jnp.zeros((Mp, Kp), xm.dtype).at[:M, :K].set(xm)

    # --- block specs: x/out tiled over M, weights grid-invariant (resident) ---
    xbytes = jnp.dtype(x.dtype).itemsize
    in_specs = [pl.BlockSpec((TM, Kp), lambda i: (i, 0))]
    flat_wb = []
    flops = 0
    bytes_accessed = Mp * Kp * xbytes + Mp * Np * xbytes
    wb_bytes = 0
    inner_np = []
    for (w_pad, b_pad) in padded_params:
        kp, n_p = w_pad.shape
        in_specs.append(pl.BlockSpec((kp, n_p), lambda i: (0, 0)))
        in_specs.append(pl.BlockSpec((1, n_p), lambda i: (0, 0)))
        flat_wb += [w_pad, b_pad]
        flops += 2 * Mp * kp * n_p
        layer_bytes = (w_pad.size * w_pad.dtype.itemsize
                       + b_pad.size * b_pad.dtype.itemsize)
        bytes_accessed += layer_bytes
        wb_bytes += layer_bytes
        inner_np.append(n_p)

    # --- optional VMEM scratch for the inter-layer activation (large dims) ---
    max_inner_np = max(inner_np[:-1]) if num_layers > 1 else 0
    use_scratch = num_layers > 1 and (TM * max_inner_np * 4) >= (256 * 1024)
    scratch_shapes = ([pltpu.VMEM((TM, max_inner_np), jnp.float32)]
                      if use_scratch else [])

    # --- explicit VMEM budget -> vmem_limit_bytes ---
    io_vmem = 2 * TM * (Kp + Np) * xbytes             # double-buffered x/out tiles
    weights_vmem = 2 * wb_bytes                       # invariant specs still 2x-buffered by default
    act_vmem = TM * max_inner_np * 4 if use_scratch else 0
    needed = io_vmem + weights_vmem + act_vmem
    vmem_cap = _vmem_capacity_cap()
    if needed > vmem_cap:
        raise ValueError(
            f"MLP weight/activation working set ({needed >> 20} MiB) exceeds the "
            f"VMEM budget ({vmem_cap >> 20} MiB); reduce tile_m/hidden_dim "
            "(per-layer tiled fallback not implemented).")
    vmem_limit = min(max(int(needed * 1.25) + (8 << 20), 32 << 20), vmem_cap)

    kernel = functools.partial(_mlp_kernel, num_layers=num_layers,
                               use_scratch=use_scratch)

    out = pl.pallas_call(
        kernel,
        out_shape=jax.ShapeDtypeStruct((Mp, Np), x.dtype),
        grid_spec=pltpu.PrefetchScalarGridSpec(
            num_scalar_prefetch=0,
            grid=(grid_m,),
            in_specs=in_specs,
            out_specs=pl.BlockSpec((TM, Np), lambda i: (i, 0)),
            scratch_shapes=tuple(scratch_shapes),
        ),
        compiler_params=pltpu.CompilerParams(
            dimension_semantics=("parallel",),
            vmem_limit_bytes=vmem_limit,
        ),
        cost_estimate=pl.CostEstimate(
            flops=flops, transcendentals=0, bytes_accessed=bytes_accessed),
    )(x_pad, *flat_wb)

    out = out[:M, :output_dim]
    return out.reshape(*lead_shape, output_dim)


def init_mlp_params(key, input_dim, hidden_dim, output_dim, num_layers,
                    dtype=jnp.float32):
    """Parameter init matching the PyTorch MLP layer shapes.

    Layer i: Linear(dims[i], dims[i+1]) with
      dims = [input_dim] + [hidden_dim]*(num_layers-1) + [output_dim]
    Weights stored as [in, out] (transpose of torch's [out, in]).
    """
    h = [hidden_dim] * (num_layers - 1)
    in_dims = [input_dim] + h
    out_dims = h + [output_dim]
    params = []
    for (n_in, n_out) in zip(in_dims, out_dims):
        kw, kb, key = jax.random.split(key, 3)
        bound = 1.0 / (n_in ** 0.5)  # torch.nn.Linear default scale
        w = jax.random.uniform(kw, (n_in, n_out), dtype, -bound, bound)
        b = jax.random.uniform(kb, (n_out,), dtype, -bound, bound)
        params.append((w, b))
    return params


def mlp_reference(params, x):
    """Pure-JAX f32 reference for correctness checking."""
    num_layers = len(params)
    for i, (w, b) in enumerate(params):
        x = jnp.dot(x, w) + b
        if i < num_layers - 1:
            x = jnp.maximum(x, 0.0)
    return x


if __name__ == "__main__":
    key = jax.random.PRNGKey(0)
    kx, kp = jax.random.split(key)

    # MLP(input_dim=32, hidden=32, output=16, num_layers=3) on x: [2, 8, 32].
    input_dim, hidden_dim, output_dim, num_layers = 32, 32, 16, 3
    x = jax.random.normal(kx, (2, 8, input_dim), dtype=jnp.float32)
    params = init_mlp_params(kp, input_dim, hidden_dim, output_dim, num_layers)

    # Pad + bf16-cast weights ONCE (hoisted out of the per-call path).
    padded_params, out_dim = prepare_mlp_params(params)

    fwd = jax.jit(functools.partial(mlp_forward, output_dim=out_dim, tile_m=512))
    out = jax.block_until_ready(fwd(padded_params, x))

    ref = mlp_reference(params, x)
    assert out.shape == (2, 8, output_dim), out.shape
    # bf16 MXU operands (f32 accumulation) -> loosened tolerance vs f32 reference.
    err = float(jnp.max(jnp.abs(out - ref)))
    assert jnp.allclose(out, ref, atol=5e-2, rtol=5e-2), f"max abs err {err}"

    print("KERNEL_OK")
</pallas_src>

<mosaic_0001>
module attributes {stable_mosaic.version = 11 : i64} {
  func.func @_mlp_kernel(%arg0: i32, %arg1: memref<8x128xf32, #tpu.memory_space<vmem>>, %arg2: memref<128x128xbf16, #tpu.memory_space<vmem>>, %arg3: memref<1x128xf32, #tpu.memory_space<vmem>>, %arg4: memref<128x128xbf16, #tpu.memory_space<vmem>>, %arg5: memref<1x128xf32, #tpu.memory_space<vmem>>, %arg6: memref<128x128xbf16, #tpu.memory_space<vmem>>, %arg7: memref<1x128xf32, #tpu.memory_space<vmem>>, %arg8: memref<8x128xf32, #tpu.memory_space<vmem>>) attributes {dimension_semantics = [#tpu.dimension_semantics<parallel>], iteration_bounds = array<i64: 2>, scalar_prefetch = 0 : i64, scratch_operands = 0 : i64, tpu.core_type = #tpu.core_type<tc>, window_params = [{transform_indices = @transform_0, window_bounds = array<i64: 8, 128>}, {pipeline_mode = #tpu.pipeline_mode<synchronous>, transform_indices = @transform_1, window_bounds = array<i64: 128, 128>}, {pipeline_mode = #tpu.pipeline_mode<synchronous>, transform_indices = @transform_2, window_bounds = array<i64: 1, 128>}, {pipeline_mode = #tpu.pipeline_mode<synchronous>, transform_indices = @transform_3, window_bounds = array<i64: 128, 128>}, {pipeline_mode = #tpu.pipeline_mode<synchronous>, transform_indices = @transform_4, window_bounds = array<i64: 1, 128>}, {pipeline_mode = #tpu.pipeline_mode<synchronous>, transform_indices = @transform_5, window_bounds = array<i64: 128, 128>}, {pipeline_mode = #tpu.pipeline_mode<synchronous>, transform_indices = @transform_6, window_bounds = array<i64: 1, 128>}, {transform_indices = @transform_7, window_bounds = array<i64: 8, 128>}]} {
    %c0 = arith.constant 0 : index
    %c0_0 = arith.constant 0 : index
    %0 = vector.load %arg1[%c0, %c0_0] : memref<8x128xf32, #tpu.memory_space<vmem>>, vector<8x128xf32>
    %1 = arith.truncf %0 : vector<8x128xf32> to vector<8x128xbf16>
    %c0_1 = arith.constant 0 : index
    %c0_2 = arith.constant 0 : index
    %2 = vector.load %arg2[%c0_1, %c0_2] : memref<128x128xbf16, #tpu.memory_space<vmem>>, vector<128x128xbf16>
    %cst = arith.constant dense<0.000000e+00> : vector<8x128xf32>
    %3 = tpu.matmul %1, %2, %cst {dimension_numbers = #tpu.dot_dimension_numbers<[1], [0], [0], [1], [0, 0, 1, 1], [], []>} : vector<8x128xbf16>, vector<128x128xbf16>, vector<8x128xf32> -> vector<8x128xf32>
    %c0_3 = arith.constant 0 : index
    %c0_4 = arith.constant 0 : index
    %4 = vector.load %arg3[%c0_3, %c0_4] : memref<1x128xf32, #tpu.memory_space<vmem>>, vector<1x128xf32>
    %5 = vector.broadcast %4 : vector<1x128xf32> to vector<8x128xf32>
    %6 = arith.addf %3, %5 : vector<8x128xf32>
    %cst_5 = arith.constant 0.000000e+00 : f32
    %7 = vector.broadcast %cst_5 : f32 to vector<8x128xf32>
    %8 = arith.maximumf %6, %7 : vector<8x128xf32>
    %9 = arith.truncf %8 : vector<8x128xf32> to vector<8x128xbf16>
    %c0_6 = arith.constant 0 : index
    %c0_7 = arith.constant 0 : index
    %10 = vector.load %arg4[%c0_6, %c0_7] : memref<128x128xbf16, #tpu.memory_space<vmem>>, vector<128x128xbf16>
    %cst_8 = arith.constant dense<0.000000e+00> : vector<8x128xf32>
    %11 = tpu.matmul %9, %10, %cst_8 {dimension_numbers = #tpu.dot_dimension_numbers<[1], [0], [0], [1], [0, 0, 1, 1], [], []>} : vector<8x128xbf16>, vector<128x128xbf16>, vector<8x128xf32> -> vector<8x128xf32>
    %c0_9 = arith.constant 0 : index
    %c0_10 = arith.constant 0 : index
    %12 = vector.load %arg5[%c0_9, %c0_10] : memref<1x128xf32, #tpu.memory_space<vmem>>, vector<1x128xf32>
    %13 = vector.broadcast %12 : vector<1x128xf32> to vector<8x128xf32>
    %14 = arith.addf %11, %13 : vector<8x128xf32>
    %cst_11 = arith.constant 0.000000e+00 : f32
    %15 = vector.broadcast %cst_11 : f32 to vector<8x128xf32>
    %16 = arith.maximumf %14, %15 : vector<8x128xf32>
    %17 = arith.truncf %16 : vector<8x128xf32> to vector<8x128xbf16>
    %c0_12 = arith.constant 0 : index
    %c0_13 = arith.constant 0 : index
    %18 = vector.load %arg6[%c0_12, %c0_13] : memref<128x128xbf16, #tpu.memory_space<vmem>>, vector<128x128xbf16>
    %cst_14 = arith.constant dense<0.000000e+00> : vector<8x128xf32>
    %19 = tpu.matmul %17, %18, %cst_14 {dimension_numbers = #tpu.dot_dimension_numbers<[1], [0], [0], [1], [0, 0, 1, 1], [], []>} : vector<8x128xbf16>, vector<128x128xbf16>, vector<8x128xf32> -> vector<8x128xf32>
    %c0_15 = arith.constant 0 : index
    %c0_16 = arith.constant 0 : index
    %20 = vector.load %arg7[%c0_15, %c0_16] : memref<1x128xf32, #tpu.memory_space<vmem>>, vector<1x128xf32>
    %21 = vector.broadcast %20 : vector<1x128xf32> to vector<8x128xf32>
    %22 = arith.addf %19, %21 : vector<8x128xf32>
    %c0_17 = arith.constant 0 : index
    %c0_18 = arith.constant 0 : index
    %23 = vector.load %arg8[%c0_17, %c0_18] : memref<8x128xf32, #tpu.memory_space<vmem>>, vector<8x128xf32>
    tpu.vector_store %arg8[%c0_17, %c0_18], %22 {strides = array<i32>} : memref<8x128xf32, #tpu.memory_space<vmem>>, vector<8x128xf32>,
    return
  }
  func.func @transform_0(%arg0: i32) -> (i32, i32) {
    %c0_i32 = arith.constant 0 : i32
    %c0_i32_0 = arith.constant 0 : i32
    return %arg0, %c0_i32 : i32, i32
  }
  func.func @transform_1(%arg0: i32) -> (i32, i32) {
    %c0_i32 = arith.constant 0 : i32
    %c0_i32_0 = arith.constant 0 : i32
    %c0_i32_1 = arith.constant 0 : i32
    return %c0_i32, %c0_i32_0 : i32, i32
  }
  func.func @transform_2(%arg0: i32) -> (i32, i32) {
    %c0_i32 = arith.constant 0 : i32
    %c0_i32_0 = arith.constant 0 : i32
    %c0_i32_1 = arith.constant 0 : i32
    return %c0_i32, %c0_i32_0 : i32, i32
  }
  func.func @transform_3(%arg0: i32) -> (i32, i32) {
    %c0_i32 = arith.constant 0 : i32
    %c0_i32_0 = arith.constant 0 : i32
    %c0_i32_1 = arith.constant 0 : i32
    return %c0_i32, %c0_i32_0 : i32, i32
  }
  func.func @transform_4(%arg0: i32) -> (i32, i32) {
    %c0_i32 = arith.constant 0 : i32
    %c0_i32_0 = arith.constant 0 : i32
    %c0_i32_1 = arith.constant 0 : i32
    return %c0_i32, %c0_i32_0 : i32, i32
  }
  func.func @transform_5(%arg0: i32) -> (i32, i32) {
    %c0_i32 = arith.constant 0 : i32
    %c0_i32_0 = arith.constant 0 : i32
    %c0_i32_1 = arith.constant 0 : i32
    return %c0_i32, %c0_i32_0 : i32, i32
  }
  func.func @transform_6(%arg0: i32) -> (i32, i32) {
    %c0_i32 = arith.constant 0 : i32
    %c0_i32_0 = arith.constant 0 : i32
    %c0_i32_1 = arith.constant 0 : i32
    return %c0_i32, %c0_i32_0 : i32, i32
  }
  func.func @transform_7(%arg0: i32) -> (i32, i32) {
    %c0_i32 = arith.constant 0 : i32
    %c0_i32_0 = arith.constant 0 : i32
    return %arg0, %c0_i32 : i32, i32
  }
}

</mosaic_0001>

<bundles_post_ra>
// kernel: mlp_forward.1
= control target key start
LH: loop header
LB: loop body
LE: loop exit
PB: predicated region body
PF: predicated region fallthrough
CT: control target
= control target key end

     0   :  { %12 = vsyncpa [#allocation3], 0  ;;  %s1150_s0 = inlined_call_operand.vmem [shape: f32[16,128], index: 0, kind: input, shape index: {}]   ;;  %s1151_s1 = inlined_call_operand.vmem [shape: bf16[128,128], index: 1, kind: input, shape index: {}]   ;;  %s1152_s2 = inlined_call_operand.vmem [shape: f32[1,128], index: 2, kind: input, shape index: {}]   ;;  %s1153_s3 = inlined_call_operand.hbm [shape: bf16[128,128], index: 3, kind: input, shape index: {}]   ;;  %s1154_s4 = inlined_call_operand.vmem [shape: f32[1,128], index: 4, kind: input, shape index: {}]   ;;  %s1155_s5 = inlined_call_operand.hbm [shape: bf16[128,128], index: 5, kind: input, shape index: {}]   ;;  %s1156_s6 = inlined_call_operand.vmem [shape: f32[1,128], index: 6, kind: input, shape index: {}]   ;;  %s1157_s7 = inlined_call_operand.vmem [shape: f32[16,128], index: 7, kind: output, shape index: {}]  }
   0x1   :  { %13 = vsyncpa [#allocation5], 0  ;;  %s1018_s24 = smov 0  }
   0x2 LB: > { %s1024_s25 = sadd.s32 4294967295, %s970_s24   ;;  %p722_p0 = scmp.ge.s32.totalorder %s970_s24, 1  ;;  %s970_s24 = sphi %s1018_s24, %s19_s24  }
   0x3   : > { %p202_p1 = scmp.lt.s32.totalorder %s970_s24, 3  ;;  %s972_s26 = smov [#allocation2]  }
   0x4   : > { %s220_s27 = sshll.u32 %s972_s26, 4  ;;  %p862_p3 = scmp.eq.s32.totalorder %s1024_s25, 0  ;;  %s221_s27 = int_to_ptr.vmem [resolvable:$true] %s220_s27 }
   0x5   : > { %p1028_p2 = pnand %p722_p0, %p202_p1  ;;  %s973_s29 = smov [#allocation4]  }
   0x6   : > { %s236_s30 = sshll.u32 %s973_s29, 4  ;;  %s915_s9 = scalar_lea.vmem %s221_s27, 1024  ;;  %s237_s30 = int_to_ptr.vmem [resolvable:$true] %s236_s30 }
   0x7   : > { %p855_p4 = pneg %p1028_p2  ;;  %p916_p7 = scmp.ne.s32.totalorder %s221_s27, %s915_s9 }
   0x8   : > { %p923_p10 = scmp.lt.s32.totalorder %s221_s27, %s221_s27  ;;  %p924_p11 = scmp.lt.s32.totalorder %s915_s9, %s915_s9 }
   0x9   : > { %p1037_p5 = pnand %p862_p3, %p855_p4 }
   0xa   : > { %p925_p12 = por %p924_p11, %p923_p10 }
   0xb   : > { %p906_p6 = pneg %p1037_p5 }
   0xd   : > { %p918_p8 = pnand %p916_p7, %p906_p6 }
   0xf   : > { %p919_p9 = pneg %p918_p8 }
  0x11   : > { %p926_p13 = pnand %p925_p12, %p919_p9 }
  0x13   : > { %929 = shalt.err (!%p926_p13)
}
  0x14   : > { %s974_s10 = smov 64   ;;  %s975_s11 = smov 4  }
  0x15   : > { %858 = dma.hbm_to_vmem [thread:$0]  (!%p1037_p5), %s1153_s3, 1024, %s221_s27, [#allocation3], %s974_s10, %s974_s10, %s975_s11  }
  0x16   : > { %s941_s14 = scalar_lea.vmem %s237_s30, 1024  ;;  %p949_p7 = scmp.lt.s32.totalorder %s237_s30, %s237_s30 }
  0x17   : > { %p942_p0 = scmp.ne.s32.totalorder %s237_s30, %s941_s14  ;;  %p950_p8 = scmp.lt.s32.totalorder %s941_s14, %s941_s14 }
  0x19   : > { %p944_p1 = pnand %p942_p0, %p906_p6  ;;  %p951_p10 = por %p950_p8, %p949_p7 }
  0x1b   : > { %p945_p4 = pneg %p944_p1 }
  0x1d   : > { %p952_p9 = pnand %p951_p10, %p945_p4 }
  0x1f   : > { %955 = shalt.err (!%p952_p9)
}
  0x20   : > { %861 = dma.hbm_to_vmem [thread:$0]  (!%p1037_p5), %s1155_s5, 1024, %s237_s30, [#allocation5], %s974_s10, %s974_s10, %s975_s11  }
  0x21   : > { %262 = sbr.rel (%p1028_p2) target bundleno = 672 (0x2a0), region = 48 }
  0x26   : > { %961 = dma.done.wait (%p862_p3), [#allocation3], 1024  }
  0x27   : > { %963 = vsyncadd (%p862_p3), [#allocation3], 4294966272 }
  0x28   : > { %965 = dma.done.wait (%p862_p3), [#allocation5], 1024  }
  0x29   : > { %967 = vsyncadd (%p862_p3), [#allocation5], 4294966272  ;;  %v976_v0 = vmov 0.0   ;;  %vm977_vm0 = vmmov 0   ;;  %v880_v1 = vld [vmem:[%s1151_s1 + $0x38] sm:$0xff]   ;;  %v881_v2 = vld [vmem:[%s1151_s1 + $0x30] sm:$0xff]  }
  0x2a   : > { %787 = vmatprep.subr.bf16.mxu0 %v976_v0  ;;  %803 = vmatprep.mubr.msk.bf16.mxu0 %vm977_vm0, %v976_v0  ;;  %v882_v3 = vld [vmem:[%s1151_s1 + $0x28] sm:$0xff]   ;;  %p296_p2 = scmp.lt.s32.totalorder %s1024_s25, 1  ;;  %v888_v4 = vld [vmem:[#allocation2 + $0x38] sm:$0xff]   ;;  %v883_v5 = vld [vmem:[%s1151_s1 + $0x20] sm:$0xff]  }
  0x2b   : > { %807 = vmatprep.subr.bf16.mxu1 %v976_v0  ;;  %823 = vmatprep.mubr.msk.bf16.mxu1 %vm977_vm0, %v976_v0  ;;  %v889_v6 = vld [vmem:[#allocation2 + $0x30] sm:$0xff]   ;;  %v884_v7 = vld [vmem:[%s1151_s1 + $0x18] sm:$0xff]   ;;  %v890_v8 = vld [vmem:[#allocation2 + $0x28] sm:$0xff]  }
  0x2c   : > { %788 = vmatpush3.bf16.msra.mxu0 %v880_v1  ;;  %s1161_s25 = smov (!%p296_p2, %s1024_s25), 1  ;;  %808 = vmatpush3.bf16.msra.mxu1 %v888_v4  ;;  %v885_v9 = vld [vmem:[%s1151_s1 + $0x10] sm:$0xff]   ;;  %v891_v10 = vld [vmem:[#allocation2 + $0x20] sm:$0xff]   ;;  %v886_v11 = vld [vmem:[%s1151_s1 + $0x8] sm:$0xff]  }
  0x2d   : > { %789 = vmatprep.subr.bf16.mxu0 %v976_v0  ;;  %809 = vmatprep.subr.bf16.mxu1 %v976_v0  ;;  %s729_s29 = sshll.u32 %s1161_s25, 3  ;;  %v892_v12 = vld [vmem:[#allocation2 + $0x18] sm:$0xff]   ;;  %v887_v13 = vld [vmem:[%s1151_s1] sm:$0xff]   ;;  %v893_v15 = vld [vmem:[#allocation2 + $0x10] sm:$0xff]  }
  0x2e   : > { %s299_s13 = scalar_lea.vmem %s1150_s0, %s729_s29  ;;  %v894_v17 = vld [vmem:[#allocation2 + $0x8] sm:$0xff]   ;;  %v895_v18 = vld [vmem:[#allocation2] sm:$0xff]   ;;  %v896_v19 = vld [vmem:[#allocation4 + $0x38] sm:$0xff]   ;;  %s303_s26 = scalar_lea.vmem %s1157_s7, %s729_s29 }
  0x2f   : > { %v305_v14 = vld [vmem:[%s299_s13] sm:$0xff]  ;;  %v897_v20 = vld [vmem:[#allocation4 + $0x30] sm:$0xff]   ;;  %v898_v21 = vld [vmem:[#allocation4 + $0x28] sm:$0xff]  }
  0x30   : > { %790 = vmatpush3.bf16.msra.mxu0 %v881_v2  ;;  %810 = vmatpush3.bf16.msra.mxu1 %v889_v6  ;;  %v306_v16 = vpack.c.bf16 %v305_v14, %v305_v14  ;;  %v899_v22 = vld [vmem:[#allocation4 + $0x20] sm:$0xff]   ;;  %v900_v23 = vld [vmem:[#allocation4 + $0x18] sm:$0xff]   ;;  %v901_v24 = vld [vmem:[#allocation4 + $0x10] sm:$0xff]  }
  0x31   : > { %791 = vmatprep.subr.bf16.mxu0 %v976_v0  ;;  %811 = vmatprep.subr.bf16.mxu1 %v976_v0  ;;  %v731_v25 = vld [vmem:[%s1152_s2] ss:$0 sm:$0xff]  ;;  %v902_v33 = vld [vmem:[#allocation4 + $0x8] sm:$0xff]  }
  0x32   : > { %v903_v34 = vld [vmem:[#allocation4] sm:$0xff]  }
  0x33   : > { %v740_v35 = vld [vmem:[%s1154_s4] ss:$0 sm:$0xff] }
  0x34   : > { %792 = vmatpush3.bf16.msra.mxu0 %v882_v3  ;;  %812 = vmatpush3.bf16.msra.mxu1 %v890_v8  ;;  %v749_v43 = vld [vmem:[%s1156_s6] ss:$0 sm:$0xff] }
  0x35   : > { %793 = vmatprep.subr.bf16.mxu0 %v976_v0  ;;  %813 = vmatprep.subr.bf16.mxu1 %v976_v0 }
  0x38   : > { %794 = vmatpush3.bf16.msra.mxu0 %v883_v5  ;;  %814 = vmatpush3.bf16.msra.mxu1 %v891_v10 }
  0x39   : > { %795 = vmatprep.subr.bf16.mxu0 %v976_v0  ;;  %815 = vmatprep.subr.bf16.mxu1 %v976_v0 }
  0x3c   : > { %796 = vmatpush3.bf16.msra.mxu0 %v884_v7  ;;  %816 = vmatpush3.bf16.msra.mxu1 %v892_v12 }
  0x3d   : > { %797 = vmatprep.subr.bf16.mxu0 %v976_v0  ;;  %817 = vmatprep.subr.bf16.mxu1 %v976_v0 }
  0x40   : > { %798 = vmatpush3.bf16.msra.mxu0 %v885_v9  ;;  %818 = vmatpush3.bf16.msra.mxu1 %v893_v15 }
  0x41   : > { %799 = vmatprep.subr.bf16.mxu0 %v976_v0  ;;  %819 = vmatprep.subr.bf16.mxu1 %v976_v0 }
  0x44   : > { %800 = vmatpush3.bf16.msra.mxu0 %v886_v11  ;;  %820 = vmatpush3.bf16.msra.mxu1 %v894_v17 }
  0x45   : > { %801 = vmatprep.subr.bf16.mxu0 %v976_v0  ;;  %821 = vmatprep.subr.bf16.mxu1 %v976_v0 }
  0x48   : > { %802 = vmatpush3.bf16.msra.mxu0 %v887_v13  ;;  %822 = vmatpush3.bf16.msra.mxu1 %v895_v18 }
  0x49   : > { %827 = vmatprep.subr.bf16.mxu0 %v976_v0 }
  0x4b   : > { %804 = vmatmul.mubr.bf16.vlgmr.msra.gmra.mxu0 %v306_v16 }
  0x4c   : > { %843 = vmatprep.mubr.msk.bf16.mxu0 %vm977_vm0, %v976_v0  ;;  %828 = vmatpush3.bf16.msra.mxu0 %v896_v19 }
  0x4d   : > { %829 = vmatprep.subr.bf16.mxu0 %v976_v0 }
  0x50   : > { %830 = vmatpush3.bf16.msra.mxu0 %v897_v20 }
  0x51   : > { %831 = vmatprep.subr.bf16.mxu0 %v976_v0 }
  0x54   : > { %832 = vmatpush3.bf16.msra.mxu0 %v898_v21 }
  0x55   : > { %833 = vmatprep.subr.bf16.mxu0 %v976_v0 }
  0x58   : > { %834 = vmatpush3.bf16.msra.mxu0 %v899_v22 }
  0x59   : > { %835 = vmatprep.subr.bf16.mxu0 %v976_v0 }
  0x5c   : > { %836 = vmatpush3.bf16.msra.mxu0 %v900_v23 }
  0x5d   : > { %837 = vmatprep.subr.bf16.mxu0 %v976_v0 }
  0x60   : > { %838 = vmatpush3.bf16.msra.mxu0 %v901_v24 }
  0x61   : > { %839 = vmatprep.subr.bf16.mxu0 %v976_v0 }
  0x64   : > { %840 = vmatpush3.bf16.msra.mxu0 %v902_v33 }
  0x65   : > { %841 = vmatprep.subr.bf16.mxu0 %v976_v0 }
  0x68   : > { %842 = vmatpush3.bf16.msra.mxu0 %v903_v34 }
 0x10b   : > { %v412_v26 = vpop.f32.mrf.mxu0 }
 0x10c   : > { %v413_v27 = vadd.f32 %v731_v25, %v412_v26 }
 0x10d   : > { %v805_v28 = vpop.f32.mrf.mxu0 }
 0x10e   : > { %v418_v29 = vmax.f32 %v413_v27, 0.0 }
 0x10f   : > { %v415_v30 = vpop.f32.mrf.mxu0 }
 0x110   : > { %v419_v31 = vpack.c.bf16 %v418_v29, %v418_v29 }
 0x111   : > { %v806_v32 = vpop.f32.mrf.mxu0 }
 0x112   : > { %824 = vmatmul.mubr.bf16.vlgmr.msra.gmra.mxu1 %v419_v31 }
 0x1d2   : > { %v525_v36 = vpop.f32.mrf.mxu1 }
 0x1d3   : > { %v526_v37 = vadd.f32 %v740_v35, %v525_v36 }
 0x1d4   : > { %v825_v38 = vpop.f32.mrf.mxu1 }
 0x1d5   : > { %v531_v39 = vmax.f32 %v526_v37, 0.0 }
 0x1d6   : > { %v528_v40 = vpop.f32.mrf.mxu1 }
 0x1d7   : > { %v532_v41 = vpack.c.bf16 %v531_v39, %v531_v39 }
 0x1d8   : > { %v826_v42 = vpop.f32.mrf.mxu1 }
 0x1d9   : > { %844 = vmatmul.mubr.bf16.vlgmr.msra.gmra.mxu0 %v532_v41 }
 0x299   : > { %v638_v44 = vpop.f32.mrf.mxu0 }
 0x29a   : > { %v639_v45 = vadd.f32 %v749_v43, %v638_v44 }
 0x29b   : > { %v845_v46 = vpop.f32.mrf.mxu0 }
 0x29c   : > { %644 = vst [vmem:[%s303_s26] sm:$0xff] %v639_v45 }
 0x29d   : > { %v641_v47 = vpop.f32.mrf.mxu0 }
 0x29f   : > { %v846_v48 = vpop.f32.mrf.mxu0 }
 0x2a0 PF: > { %s19_s24 = sadd.s32 1, %s970_s24  }
 0x2a1   : > { %p16_p3 = scmp.ge.s32.totalorder %s19_s24, 4  }
 0x2a3   :  { %18 = sbr.rel (!%p16_p3) target bundleno = 2 (0x2), region = 87 }
 0x2a8   :  { %664 = vsyncpa [#allocation3], 1 }
 0x2a9   :  { %666 = vsyncpa [#allocation3 + $0x1], 1 }
 0x2aa   :  { %667 = vsyncpa [#allocation5], 1 }

</bundles_post_ra>
